<compile_context>
chip_gen: v7x
topology: tpu7x:2x2x1
jax: 0.10.0
libtpu: 0.0.40
codegen_flags: <defaults>
</compile_context>

<pallas_src>
import functools

import jax
import jax.numpy as jnp
from jax.experimental import pallas as pl
from jax.experimental.pallas import tpu as pltpu


def make_channel_attention_kernel(thw, lw, tail_len):
    """thw: lanes per x block (multiple of 128). lw: chunk width (128).
    tail_len: valid lanes of the last HW tile (0 => every tile is full)."""

    def kernel(x_ref, w1t_ref, w2t_ref, o_ref, acc_ref):
        # x_ref:   (bt, C, thw)   input tile (f32 or bf16)
        # w1t_ref: (C, hidden)    fc1.weight transposed (1x1 conv == matmul), f32
        # w2t_ref: (hidden, C)    fc2.weight transposed, f32
        # o_ref:   (bt, 1, C)     sigmoid(fc2(relu(fc1(maxpool(x)))))
        # acc_ref: (bt, C, lw)    f32 running-max accumulator (VMEM scratch)
        k = pl.program_id(1)
        last = pl.num_programs(1) - 1

        @pl.when(k == 0)
        def _init():
            acc_ref[...] = jnp.full(acc_ref.shape, -jnp.inf, dtype=acc_ref.dtype)

        def fold(n_valid):
            # Stream aligned 128-lane chunks from the ref and fold them into the accumulator
            # with element-wise maxima only (pure VPU work, ld-max-st per chunk keeps vreg
            # pressure flat). The single cross-lane reduce happens once in the finalize.
            n_chunks = pl.cdiv(n_valid, lw)
            for j in range(n_chunks):  # static unroll, aligned slices
                start = j * lw
                chunk = x_ref[..., start:start + lw].astype(jnp.float32)
                if start + lw > n_valid:
                    # Partial tail chunk: lanes beyond the real HW extent hold undefined data
                    # (possibly NaN) because the edge DMA is masked -- force them to -inf,
                    # the identity of max.
                    lane = jax.lax.broadcasted_iota(jnp.int32, chunk.shape, chunk.ndim - 1)
                    chunk = jnp.where(lane < (n_valid - start), chunk, -jnp.inf)
                acc_ref[...] = jnp.maximum(acc_ref[...], chunk)

        if tail_len:
            @pl.when(k != last)
            def _full_tiles():
                fold(thw)

            @pl.when(k == last)
            def _tail_tile():
                fold(tail_len)
        else:
            fold(thw)

        @pl.when(k == last)
        def _finalize():
            pooled = jnp.max(acc_ref[...], axis=-1)                      # (bt, C) f32
            h = jnp.dot(pooled, w1t_ref[...],
                        preferred_element_type=jnp.float32)              # fc1
            h = jnp.maximum(h, 0.0)                                      # ReLU
            y = jnp.dot(h, w2t_ref[...],
                        preferred_element_type=jnp.float32)              # fc2
            o_ref[...] = jax.nn.sigmoid(y)[:, None, :].astype(o_ref.dtype)

    return kernel


def _vmem_budgets():
    """(per-block byte budget, scoped vmem_limit_bytes), gated on the TPU generation."""
    try:
        cap = int(getattr(pltpu.get_tpu_info(), "vmem_capacity_bytes", 0)) or (64 << 20)
    except Exception:
        cap = 64 << 20                      # conservative fallback (v7x-sized)
    if cap >= (96 << 20):                   # v5e / v6e: 128 MiB physical VMEM
        return 8 << 20, 64 << 20
    return 4 << 20, 32 << 20                # v7x: 64 MiB physical VMEM


def channel_attention(x, w1, w2, *, batch_tile=None, lane_tile=None):
    """x: (B, C, H, W) NCHW (f32 or bf16).  w1: (C//16, C, 1, 1).  w2: (C, C//16, 1, 1)."""
    B, C, H, W = x.shape
    hidden = w1.shape[0]
    assert w1.shape == (hidden, C, 1, 1) and w2.shape == (C, hidden, 1, 1)
    assert jnp.issubdtype(x.dtype, jnp.floating), "ChannelAttention expects floating-point x"

    hw = H * W
    itemsize = jnp.dtype(x.dtype).itemsize
    block_budget, vmem_limit = _vmem_budgets()

    if batch_tile is None:
        # Largest divisor of B that is <= 8 while keeping >= 2 iterations on the parallel axis
        # (so both v7x TensorCores get work); v5e/v6e are single-TC and don't care.
        batch_tile = 1
        limit = min(8, max(1, B // 2))
        for bt in range(limit, 0, -1):
            if B % bt == 0:
                batch_tile = bt
                break
    assert B % batch_tile == 0

    hw_128 = pl.cdiv(hw, 128) * 128
    if lane_tile is None:
        # Largest multiple of 128 such that one (batch_tile, C, lane_tile) block fits the
        # per-generation budget (double-buffered by BlockSpec), capped at the padded HW extent.
        row_bytes = batch_tile * C * itemsize
        cap = max(128, block_budget // max(row_bytes, 1))
        lane_tile = min((cap // 128) * 128, hw_128)
    thw = int(lane_tile)
    assert thw % 128 == 0 and thw >= 128

    num_k = pl.cdiv(hw, thw)
    tail_len = hw - (num_k - 1) * thw
    if tail_len == thw:
        tail_len = 0                        # HW divides evenly: no in-kernel masking needed

    # Free metadata reshape (NCHW is contiguous): C on sublanes, HW on lanes. No extra HBM pass.
    x_flat = x.reshape(B, C, hw)
    w1t = w1.reshape(hidden, C).T.astype(jnp.float32)   # (C, hidden)
    w2t = w2.reshape(C, hidden).T.astype(jnp.float32)   # (hidden, C)

    lw = 128
    grid = (B // batch_tile, num_k)

    flops = B * C * hw + 4 * B * C * hidden             # max-compares + two tiny matmuls
    bytes_accessed = (x_flat.size * itemsize + (w1t.size + w2t.size) * 4
                      + B * C * itemsize)

    kernel = make_channel_attention_kernel(thw=thw, lw=lw, tail_len=tail_len)

    out = pl.pallas_call(
        kernel,
        out_shape=jax.ShapeDtypeStruct((B, 1, C), x.dtype),
        grid_spec=pltpu.PrefetchScalarGridSpec(
            num_scalar_prefetch=0,
            grid=grid,
            in_specs=[
                pl.BlockSpec((batch_tile, C, thw), lambda i, k: (i, 0, k)),
                pl.BlockSpec((C, hidden), lambda i, k: (0, 0)),
                pl.BlockSpec((hidden, C), lambda i, k: (0, 0)),
            ],
            out_specs=pl.BlockSpec((batch_tile, 1, C), lambda i, k: (i, 0, 0)),
            scratch_shapes=[pltpu.VMEM((batch_tile, C, lw), jnp.float32)],
        ),
        compiler_params=pltpu.CompilerParams(
            dimension_semantics=("parallel", "arbitrary"),
            vmem_limit_bytes=vmem_limit,
        ),
        cost_estimate=pl.CostEstimate(
            flops=flops, transcendentals=B * C, bytes_accessed=bytes_accessed),
    )(x_flat, w1t, w2t)

    return out.reshape(B, C, 1, 1)


def _reference(x, w1, w2):
    B, C, H, W = x.shape
    hidden = w1.shape[0]
    pooled = jnp.max(x.reshape(B, C, H * W).astype(jnp.float32), axis=-1)
    h = jnp.maximum(pooled @ w1.reshape(hidden, C).astype(jnp.float32).T, 0.0)
    y = h @ w2.reshape(C, hidden).astype(jnp.float32).T
    return jax.nn.sigmoid(y).reshape(B, C, 1, 1)


if __name__ == "__main__":
    key = jax.random.PRNGKey(0)
    kx, k1, k2 = jax.random.split(key, 3)

    # --- main f32 test: in_planes=64 -> hidden=4; lane_tile=128 forces a 2-step HW reduction
    #     exercising the pipelined accumulate + pl.when(init/finalize) paths.
    B, C, H, W = 2, 64, 16, 16
    hidden = C // 16
    x = jax.random.normal(kx, (B, C, H, W), dtype=jnp.float32)
    w1 = jax.random.normal(k1, (hidden, C, 1, 1), dtype=jnp.float32) * 0.1
    w2 = jax.random.normal(k2, (C, hidden, 1, 1), dtype=jnp.float32) * 0.1

    out_tiled = channel_attention(x, w1, w2, lane_tile=128)   # grid = (2, 2)
    out_auto = channel_attention(x, w1, w2)                   # auto batch_tile / lane_tile
    ref = _reference(x, w1, w2)
    jax.block_until_ready((out_tiled, out_auto))
    assert out_tiled.shape == (B, C, 1, 1)
    assert jnp.allclose(out_tiled, ref, atol=1e-5, rtol=1e-5)
    assert jnp.allclose(out_auto, ref, atol=1e-5, rtol=1e-5)

    # --- bf16 input path (halves HBM bytes; per-chunk max upcasts to f32 so it is exact and
    #     also lowers on v5e which has no bf16 VALU).
    x_bf16 = x.astype(jnp.bfloat16)
    out_bf16 = channel_attention(x_bf16, w1, w2, lane_tile=128)
    ref_bf16 = _reference(x_bf16, w1, w2)
    jax.block_until_ready(out_bf16)
    assert out_bf16.dtype == jnp.bfloat16
    assert jnp.allclose(out_bf16.astype(jnp.float32), ref_bf16, atol=2e-2, rtol=2e-2)

    # --- ragged HW: 12x12 = 144 lanes with lane_tile=128 -> partial last tile whose
    #     out-of-bounds lanes are masked to -inf inside the kernel (no wrapper-side pad pass).
    B2, C2, H2, W2 = 2, 32, 12, 12
    hidden2 = C2 // 16
    x2 = jax.random.normal(kx, (B2, C2, H2, W2), dtype=jnp.float32)
    w1b = jax.random.normal(k1, (hidden2, C2, 1, 1), dtype=jnp.float32) * 0.1
    w2b = jax.random.normal(k2, (C2, hidden2, 1, 1), dtype=jnp.float32) * 0.1
    out_tail = channel_attention(x2, w1b, w2b, lane_tile=128)
    ref_tail = _reference(x2, w1b, w2b)
    jax.block_until_ready(out_tail)
    assert jnp.allclose(out_tail, ref_tail, atol=1e-5, rtol=1e-5)

    print("KERNEL_OK")
</pallas_src>

<mosaic_0001>
module attributes {stable_mosaic.version = 11 : i64} {
  func.func @kernel(%arg0: i32, %arg1: i32, %arg2: memref<1x64x128xf32, #tpu.memory_space<vmem>>, %arg3: memref<64x4xf32, #tpu.memory_space<vmem>>, %arg4: memref<4x64xf32, #tpu.memory_space<vmem>>, %arg5: memref<1x1x64xf32, #tpu.memory_space<vmem>>, %arg6: memref<1x64x128xf32, #tpu.memory_space<vmem>>) attributes {dimension_semantics = [#tpu.dimension_semantics<parallel>, #tpu.dimension_semantics<arbitrary>], iteration_bounds = array<i64: 2, 2>, scalar_prefetch = 0 : i64, scratch_operands = 1 : i64, tpu.core_type = #tpu.core_type<tc>, window_params = [{transform_indices = @transform_0, window_bounds = array<i64: 1, 64, 128>}, {pipeline_mode = #tpu.pipeline_mode<synchronous>, transform_indices = @transform_1, window_bounds = array<i64: 64, 4>}, {pipeline_mode = #tpu.pipeline_mode<synchronous>, transform_indices = @transform_2, window_bounds = array<i64: 4, 64>}, {transform_indices = @transform_3, window_bounds = array<i64: 1, 1, 64>}]} {
    %c0_i32 = arith.constant 0 : i32
    %0 = arith.cmpi eq, %arg1, %c0_i32 : i32
    %1 = arith.extui %0 : i1 to i32
    %c0_i32_0 = arith.constant 0 : i32
    %2 = arith.cmpi ne, %1, %c0_i32_0 : i32
    scf.if %2 {
      %cst = arith.constant 0xFF800000 : f32
      %10 = vector.broadcast %cst : f32 to vector<1x64x128xf32>
      %c0_10 = arith.constant 0 : index
      %c0_11 = arith.constant 0 : index
      %c0_12 = arith.constant 0 : index
      %11 = vector.load %arg6[%c0_10, %c0_11, %c0_12] : memref<1x64x128xf32, #tpu.memory_space<vmem>>, vector<1x64x128xf32>
      tpu.vector_store %arg6[%c0_10, %c0_11, %c0_12], %10 {strides = array<i32>} : memref<1x64x128xf32, #tpu.memory_space<vmem>>, vector<1x64x128xf32>,
    } else {
    }
    %c0 = arith.constant 0 : index
    %c0_1 = arith.constant 0 : index
    %c0_2 = arith.constant 0 : index
    %3 = vector.load %arg2[%c0, %c0_1, %c0_2] : memref<1x64x128xf32, #tpu.memory_space<vmem>>, vector<1x64x128xf32>
    %c0_3 = arith.constant 0 : index
    %c0_4 = arith.constant 0 : index
    %c0_5 = arith.constant 0 : index
    %4 = vector.load %arg6[%c0_3, %c0_4, %c0_5] : memref<1x64x128xf32, #tpu.memory_space<vmem>>, vector<1x64x128xf32>
    %5 = arith.maximumf %4, %3 : vector<1x64x128xf32>
    %c0_6 = arith.constant 0 : index
    %c0_7 = arith.constant 0 : index
    %c0_8 = arith.constant 0 : index
    %6 = vector.load %arg6[%c0_6, %c0_7, %c0_8] : memref<1x64x128xf32, #tpu.memory_space<vmem>>, vector<1x64x128xf32>
    tpu.vector_store %arg6[%c0_6, %c0_7, %c0_8], %5 {strides = array<i32>} : memref<1x64x128xf32, #tpu.memory_space<vmem>>, vector<1x64x128xf32>,
    %c1_i32 = arith.constant 1 : i32
    %7 = arith.cmpi eq, %arg1, %c1_i32 : i32
    %8 = arith.extui %7 : i1 to i32
    %c0_i32_9 = arith.constant 0 : i32
    %9 = arith.cmpi ne, %8, %c0_i32_9 : i32
    scf.if %9 {
      %c0_10 = arith.constant 0 : index
      %c0_11 = arith.constant 0 : index
      %c0_12 = arith.constant 0 : index
      %10 = vector.load %arg6[%c0_10, %c0_11, %c0_12] : memref<1x64x128xf32, #tpu.memory_space<vmem>>, vector<1x64x128xf32>
      %cst = arith.constant dense<0xFF800000> : vector<1x64xf32>
      %11 = vector.multi_reduction <maximumf>, %10, %cst [2] : vector<1x64x128xf32> to vector<1x64xf32>
      %c0_13 = arith.constant 0 : index
      %c0_14 = arith.constant 0 : index
      %12 = vector.load %arg3[%c0_13, %c0_14] : memref<64x4xf32, #tpu.memory_space<vmem>>, vector<64x4xf32>
      %cst_15 = arith.constant dense<0.000000e+00> : vector<1x4xf32>
      %13 = tpu.matmul %11, %12, %cst_15 {dimension_numbers = #tpu.dot_dimension_numbers<[1], [0], [0], [1], [0, 0, 1, 1], [], []>} : vector<1x64xf32>, vector<64x4xf32>, vector<1x4xf32> -> vector<1x4xf32>
      %cst_16 = arith.constant 0.000000e+00 : f32
      %14 = vector.broadcast %cst_16 : f32 to vector<1x4xf32>
      %15 = arith.maximumf %13, %14 : vector<1x4xf32>
      %c0_17 = arith.constant 0 : index
      %c0_18 = arith.constant 0 : index
      %16 = vector.load %arg4[%c0_17, %c0_18] : memref<4x64xf32, #tpu.memory_space<vmem>>, vector<4x64xf32>
      %cst_19 = arith.constant dense<0.000000e+00> : vector<1x64xf32>
      %17 = tpu.matmul %15, %16, %cst_19 {dimension_numbers = #tpu.dot_dimension_numbers<[1], [0], [0], [1], [0, 0, 1, 1], [], []>} : vector<1x4xf32>, vector<4x64xf32>, vector<1x64xf32> -> vector<1x64xf32>
      %18 = arith.negf %17 : vector<1x64xf32>
      %19 = math.exp %18 : vector<1x64xf32>
      %cst_20 = arith.constant 1.000000e+00 : f32
      %20 = vector.broadcast %cst_20 : f32 to vector<1x64xf32>
      %21 = arith.addf %20, %19 : vector<1x64xf32>
      %22 = arith.divf %20, %21 : vector<1x64xf32>
      %23 = vector.shape_cast %22 : vector<1x64xf32> to vector<1x1x64xf32>
      %c0_21 = arith.constant 0 : index
      %c0_22 = arith.constant 0 : index
      %c0_23 = arith.constant 0 : index
      %24 = vector.load %arg5[%c0_21, %c0_22, %c0_23] : memref<1x1x64xf32, #tpu.memory_space<vmem>>, vector<1x1x64xf32>
      tpu.vector_store %arg5[%c0_21, %c0_22, %c0_23], %23 {strides = array<i32>} : memref<1x1x64xf32, #tpu.memory_space<vmem>>, vector<1x1x64xf32>,
    } else {
    }
    return
  }
  func.func @transform_0(%arg0: i32, %arg1: i32) -> (i32, i32, i32) {
    %c0_i32 = arith.constant 0 : i32
    %c0_i32_0 = arith.constant 0 : i32
    return %arg0, %c0_i32, %arg1 : i32, i32, i32
  }
  func.func @transform_1(%arg0: i32, %arg1: i32) -> (i32, i32) {
    %c0_i32 = arith.constant 0 : i32
    %c0_i32_0 = arith.constant 0 : i32
    %c0_i32_1 = arith.constant 0 : i32
    return %c0_i32, %c0_i32_0 : i32, i32
  }
  func.func @transform_2(%arg0: i32, %arg1: i32) -> (i32, i32) {
    %c0_i32 = arith.constant 0 : i32
    %c0_i32_0 = arith.constant 0 : i32
    %c0_i32_1 = arith.constant 0 : i32
    return %c0_i32, %c0_i32_0 : i32, i32
  }
  func.func @transform_3(%arg0: i32, %arg1: i32) -> (i32, i32, i32) {
    %c0_i32 = arith.constant 0 : i32
    %c0_i32_0 = arith.constant 0 : i32
    %c0_i32_1 = arith.constant 0 : i32
    return %arg0, %c0_i32, %c0_i32_0 : i32, i32, i32
  }
}

</mosaic_0001>

<bundles_post_ra>
// kernel: tpu_custom_call.1
= control target key start
LH: loop header
LB: loop body
LE: loop exit
PB: predicated region body
PF: predicated region fallthrough
CT: control target
= control target key end

     0   :  { %8 = vsyncpa [#allocation4], 0  ;;  %s1218_s0 = inlined_call_operand.hbm [shape: f32[2,64,256], index: 0, kind: input, shape index: {}]   ;;  %s1219_s1 = inlined_call_operand.vmem [shape: f32[64,4], index: 1, kind: input, shape index: {}]   ;;  %s1220_s2 = inlined_call_operand.vmem [shape: f32[4,64], index: 2, kind: input, shape index: {}]   ;;  %s1221_s3 = inlined_call_operand.hbm [shape: f32[2,1,64], index: 3, kind: output, shape index: {}]  }
   0x1   :  { %10 = vsyncpa [#allocation4 + $0x1], 0 }
   0x2   :  { %11 = vsyncpa [#allocation5], 0 }
   0x3   :  { %13 = vsyncpa [#allocation5 + $0x1], 0  ;;  %s960_s12 = smov 0   ;;  %s962_s13 = smov 0  }
   0x4   :  { %s964_s14 = smov 0   ;;  %s966_s15 = smov 0  }
   0x5   :  { %s968_s16 = smov 0   ;;  %s970_s17 = smov 0  }
   0x6   :  { %s972_s18 = smov 0   ;;  %s974_s19 = smov 0  }
   0x7   :  { %s976_s20 = smov 0   ;;  %s978_s21 = smov 0  }
   0x8   :  { %s980_s22 = smov 0  }
   0x9 LB: > { %s599_s23 = sadd.s32 4294967295, %s929_s22   ;;  %s600_s24 = sadd.s32 4294967294, %s929_s22   ;;  %s929_s22 = sphi %s980_s22, %s19_s22   ;;  %s925_s21 = sphi %s978_s21, %s1245_s21   ;;  %s921_s20 = sphi %s976_s20, %s1244_s20   ;;  %s917_s19 = sphi %s974_s19, %s1243_s19   ;;  %s913_s18 = sphi %s972_s18, %s1242_s18   ;;  %s909_s17 = sphi %s970_s17, %s1241_s17   ;;  %s905_s16 = sphi %s968_s16, %s1240_s16   ;;  %s901_s15 = sphi %s966_s15, %s1239_s15   ;;  %s897_s14 = sphi %s964_s14, %s1238_s14   ;;  %s893_s13 = sphi %s962_s13, %s1237_s13   ;;  %s889_s12 = sphi %s960_s12, %s1236_s12  }
   0xa   : > { %s28_s25 = sadd.s32 1, %s921_s20  ;;  %s31_s26 = sadd.s32 1, %s925_s21 }
   0xb   : > { %p29_p0 = scmp.ge.s32.totalorder %s28_s25, 2  ;;  %s40_s27 = sadd.s32 1, %s909_s17 }
   0xc   : > { %p47_p1 = scmp.ne.s32.totalorder %s909_s17, %s905_s16  ;;  %p48_p2 = scmp.eq.s32.totalorder %s929_s22, 0 }
   0xd   : > { %s1247_s25 = smov (%p29_p0, %s28_s25), 0  ;;  %s1249_s26 = smov (!%p29_p0, %s31_s26), %s925_s21 }
   0xe   : > { %1225 = sst [smem:[#allocation9_spill]] %s1247_s25  ;;  %s36_s28 = ssub.s32 %s921_s20, %s1247_s25 }
   0xf   : > { %p1026_p3 = por %p48_p2, %p47_p1  ;;  %p33_p4 = scmp.ge.s32.totalorder %s1249_s26, 2 }
  0x10   : > { %p53_p5 = scmp.ne.s32.totalorder %s905_s16, %s901_s15  ;;  %p54_p6 = scmp.eq.s32.totalorder %s599_s23, 0 }
  0x11   : > { %s108_s30 = sadd.s32 1, %s897_s14  ;;  %s1251_s26 = smov (%p33_p4, %s1249_s26), 0 }
  0x12   : > { %1227 = sst [smem:[#allocation10_spill]] %s1251_s26  ;;  %p1034_p7 = por %p54_p6, %p53_p5 }
  0x13   : > { %p118_p8 = scmp.ne.s32.totalorder %s897_s14, %s893_s13  ;;  %s35_s5 = ssub.s32 %s925_s21, %s1251_s26 }
  0x14   : > { %p119_p9 = scmp.eq.s32.totalorder %s599_s23, 3  ;;  %s37_s6 = sor.u32 %s36_s28, %s35_s5 }
  0x15   : > { %p106_p10 = scmp.eq.s32.totalorder %s35_s5, 0  ;;  %p38_p11 = scmp.eq.s32.totalorder %s37_s6, 0 }
  0x16   : > { %p1042_p12 = por %p119_p9, %p118_p8  ;;  %p124_p13 = scmp.ne.s32.totalorder %s893_s13, %s889_s12 }
  0x17   : > { %s1047_s8 = scalar_select %p106_p10, %s897_s14, %s108_s30  }
  0x18   : > { %s1229_s7 = scalar_select %p1042_p12, 1, 0 }
  0x19   : > { %s1050_s9 = scalar_select %p38_p11, %s909_s17, %s40_s27  }
  0x1a   : > { %p125_p0 = scmp.eq.s32.totalorder %s600_s24, 3  ;;  %p676_p1 = scmp.lt.s32.totalorder %s929_s22, 4 }
  0x1b   : > { %s151_s11 = sand.u32 1, %s909_s17   ;;  %s604_s23 = sshll.u32 %s925_s21, 4 }
  0x1c   : > { %p1055_p2 = por %p125_p0, %p124_p13  ;;  %s603_s15 = sshll.u32 %s151_s11, 6 }
  0x1d   : > { %s160_s28 = sadd.s32 %s921_s20, %s604_s23  ;;  %s155_s5 = scalar_lea.vmem [#allocation3], %s603_s15 }
  0x1e   : > { %s1230_s10 = scalar_select %p1055_p2, 1, 0 }
  0x1f   : > { %s163_s6 = sshll.u32 %s155_s5, 4  ;;  %s605_s26 = sshll.u32 %s160_s28, 7  ;;  %s1062_s6 = int_to_ptr.vmem [resolvable:$true] %s163_s6 }
  0x20   : > { %s1067_s27 = scalar_lea.hbm %s1218_s0, %s605_s26  ;;  %p1071_p4 = pnand %p676_p1, %p1026_p3 }
  0x21   : > { %s1075_s15 = scalar_lea.sflag [#allocation4], %s151_s11  ;;  %s777_s23 = scalar_lea.hbm %s1067_s27, 1024 }
  0x22   : > { %p778_p5 = scmp.ne.s32.totalorder %s1067_s27, %s777_s23  ;;  %p779_p6 = pneg %p1071_p4 }
  0x23   : > { %s782_s29 = scalar_lea.hbm %s1218_s0, 4096  ;;  %p783_p3 = scmp.lt.u32.totalorder %s1067_s27, %s1218_s0 }
  0x24   : > { %p780_p8 = pnand %p779_p6, %p778_p5  ;;  %p784_p10 = scmp.lt.u32.totalorder %s782_s29, %s777_s23 }
  0x25   : > { %p786_p13 = scmp.lt.u32.totalorder %s777_s23, %s1067_s27 }
  0x26   : > { %p781_p9 = pneg %p780_p8  ;;  %p785_p11 = por %p784_p10, %p783_p3 }
  0x28   : > { %p787_p0 = por %p786_p13, %p785_p11 }
  0x2a   : > { %p788_p1 = pnand %p787_p0, %p781_p9 }
  0x2c   : > { %791 = shalt.err (!%p788_p1)
}
  0x2d   : > { %s792_s11 = scalar_lea.vmem %s1062_s6, 1024  ;;  %s931_s30 = smov [#allocation3]  }
  0x2e   : > { %p793_p5 = scmp.ne.s32.totalorder %s1062_s6, %s792_s11  ;;  %s797_s25 = sshll.u32 %s931_s30, 4  ;;  %s798_s25 = int_to_ptr.vmem [resolvable:$false] %s797_s25 }
  0x2f   : > { %s799_s26 = scalar_lea.vmem %s798_s25, 2048  ;;  %p800_p12 = scmp.lt.s32.totalorder %s1062_s6, %s798_s25 }
  0x30   : > { %p795_p8 = pnand %p793_p5, %p779_p6  ;;  %p801_p3 = scmp.lt.s32.totalorder %s799_s26, %s792_s11 }
  0x32   : > { %p796_p2 = pneg %p795_p8  ;;  %p802_p10 = por %p801_p3, %p800_p12 }
  0x34   : > { %p803_p11 = pnand %p802_p10, %p796_p2 }
  0x36   : > { %806 = shalt.err (!%p803_p11)
}
  0x37   : > { %s932_s23 = smov 256   ;;  %s933_s29 = smov 128  }
  0x38   : > { %s934_s28 = smov 8   ;;  %p606_p6 = scmp.ge.s32.totalorder %s929_s22, 1 }
  0x39   : > { %671 = dma.hbm_to_vmem [thread:$0]  (!%p1071_p4), %s1067_s27, 1024, %s1062_s6, %s1075_s15, %s932_s23, %s933_s29, %s934_s28  }
  0x3a   : > { %p171_p9 = scmp.lt.s32.totalorder %s929_s22, 5 }
  0x3c   : > { %p172_p13 = pnand %p606_p6, %p171_p9 }
  0x3d   : > { %s177_s5 = sand.u32 (!%p172_p13), 1, %s905_s16  }
  0x3e   : > { %175 = sbr.rel (%p172_p13) target bundleno = 727 (0x2d7), region = 32  ;;  %s607_s11 = sshll.u32 (!%p172_p13), %s177_s5, 6 }
  0x3f   : > { %s178_s30 = scalar_lea.sflag (!%p172_p13), [#allocation4], %s177_s5  ;;  %s1106_s25 = scalar_lea.vmem (!%p172_p13), [#allocation3], %s607_s11 }
  0x45   : > { %880 = dma.done.wait (%p1034_p7), %s178_s30, 1024  }
  0x46   : > { %882 = vsyncadd (%p1034_p7), %s178_s30, 4294966272  ;;  %s201_s24 = sand.u32 1, %s893_s13   ;;  %p608_p12 = scmp.ne.s32.totalorder %s913_s18, 0 }
  0x47   : > { %s1115_s6 = scalar_lea.vmem [#allocation6], %s201_s24  ;;  %v935_v0 = vmov (!%p608_p12), -inf  }
  0x48   : > { %206 = sbr.rel (%p608_p12) target bundleno = 79 (0x4f), region = 40  ;;  %207 = vst [vmem:[#allocation2] sm:$0xff] (!%p608_p12), %v935_v0  ;;  %208 = vst [vmem:[#allocation2 + $0x8] sm:$0xff] (!%p608_p12), %v935_v0 }
  0x49   : > { %209 = vst [vmem:[#allocation2 + $0x10] sm:$0xff] (!%p608_p12), %v935_v0  ;;  %210 = vst [vmem:[#allocation2 + $0x18] sm:$0xff] (!%p608_p12), %v935_v0 }
  0x4a   : > { %211 = vst [vmem:[#allocation2 + $0x20] sm:$0xff] (!%p608_p12), %v935_v0  ;;  %212 = vst [vmem:[#allocation2 + $0x28] sm:$0xff] (!%p608_p12), %v935_v0 }
  0x4b   : > { %213 = vst [vmem:[#allocation2 + $0x30] sm:$0xff] (!%p608_p12), %v935_v0  ;;  %214 = vst [vmem:[#allocation2 + $0x38] sm:$0xff] (!%p608_p12), %v935_v0 }
  0x4f PF: > { %v215_v1 = vld [vmem:[%s1106_s25] sm:$0xff]  ;;  %v216_v3 = vld [vmem:[%s1106_s25 + $0x8] sm:$0xff]  ;;  %v217_v6 = vld [vmem:[%s1106_s25 + $0x10] sm:$0xff]  ;;  %p609_p7 = scmp.ne.s32.totalorder %s913_s18, 1 }
  0x50   : > { %v223_v2 = vld [vmem:[#allocation2] sm:$0xff]  ;;  %v224_v5 = vld [vmem:[#allocation2 + $0x8] sm:$0xff]  ;;  %v225_v7 = vld [vmem:[#allocation2 + $0x10] sm:$0xff]  ;;  %v936_v36 = vmov (!%p609_p7), 0.0|0.0   ;;  %vm937_vm0 = vmmov (!%p609_p7), 0   ;;  %v938_v46 = vmov (!%p609_p7), 0.0   ;;  %v291_v47 = vlaneseq (!%p609_p7) }
  0x51   : > { %v231_v4 = vmax.f32 %v223_v2, %v215_v1  ;;  %v232_v8 = vmax.f32 %v224_v5, %v216_v3  ;;  %v233_v9 = vmax.f32 %v225_v7, %v217_v6  ;;  %v218_v10 = vld [vmem:[%s1106_s25 + $0x18] sm:$0xff]  ;;  %v219_v12 = vld [vmem:[%s1106_s25 + $0x20] sm:$0xff]  ;;  %v220_v15 = vld [vmem:[%s1106_s25 + $0x28] sm:$0xff]  ;;  %250 = sbr.rel (%p609_p7) target bundleno = 702 (0x2be), region = 44  ;;  %652 = vmatprep.subr.bf16.mxu0 (!%p609_p7), %v936_v36  ;;  %644 = vmatprep.mubr.msk.f32.mxu0 (!%p609_p7), %vm937_vm0, %v938_v46  ;;  %vm302_vm1 = vcmask (!%p609_p7), 130112  }
  0x52   : > { %v226_v11 = vld [vmem:[#allocation2 + $0x18] sm:$0xff]  ;;  %v227_v14 = vld [vmem:[#allocation2 + $0x20] sm:$0xff]  ;;  %v228_v16 = vld [vmem:[#allocation2 + $0x28] sm:$0xff]  ;;  %647 = vmatprep.subr.mxu1 (!%p609_p7), %v938_v46  ;;  %649 = vmatprep.mubr.msk.f32.mxu1 (!%p609_p7), %vm937_vm0, %v938_v46  ;;  %v292_v48 = vand.u32 (!%p609_p7), 127, %v291_v47  ;;  %v294_v49 = vshrl.u32 (!%p609_p7), %v291_v47, 7  ;;  %vm309_vm2 = vcmask (!%p609_p7), 195712  }
  0x53   : > { %239 = vst [vmem:[#allocation2] sm:$0xff] %v231_v4  ;;  %v234_v13 = vmax.f32 %v226_v11, %v218_v10  ;;  %240 = vst [vmem:[#allocation2 + $0x8] sm:$0xff] %v232_v8  ;;  %v235_v17 = vmax.f32 %v227_v14, %v219_v12  ;;  %v236_v18 = vmax.f32 %v228_v16, %v220_v15  ;;  %v221_v19 = vld [vmem:[%s1106_s25 + $0x30] sm:$0xff]  ;;  %v222_v21 = vld [vmem:[%s1106_s25 + $0x38] sm:$0xff]  ;;  %vm316_vm3 = vcmask (!%p609_p7), 261312  }
  0x54   : > { %241 = vst [vmem:[#allocation2 + $0x10] sm:$0xff] %v233_v9  ;;  %v229_v20 = vld [vmem:[#allocation2 + $0x30] sm:$0xff]  ;;  %v230_v23 = vld [vmem:[#allocation2 + $0x38] sm:$0xff]  ;;  %v275_v33 = vld [vmem:[%s1219_s1] sm:$0xff] (!%p609_p7)  ;;  %v297_v50 = vadd.s32 (!%p609_p7), 4294967288, %v292_v48  ;;  %v311_v51 = vadd.s32 (!%p609_p7), 4294967272, %v292_v48  ;;  %v295_v56 = vsub.s32 (!%p609_p7), %v292_v48, %v294_v49 }
  0x55   : > { %242 = vst [vmem:[#allocation2 + $0x18] sm:$0xff] %v234_v13  ;;  %v237_v22 = vmax.f32 %v229_v20, %v221_v19  ;;  %243 = vst [vmem:[#allocation2 + $0x20] sm:$0xff] %v235_v17  ;;  %v238_v24 = vmax.f32 %v230_v23, %v222_v21  ;;  %v276_v34 = vld [vmem:[%s1219_s1 + $0x8] sm:$0xff] (!%p609_p7)  ;;  %v277_v37 = vld [vmem:[%s1219_s1 + $0x10] sm:$0xff] (!%p609_p7)  ;;  %v304_v52 = vadd.s32 (!%p609_p7), 4294967280, %v292_v48  ;;  %v318_v55 = vadd.s32 (!%p609_p7), 4294967264, %v292_v48 }
  0x56   : > { %244 = vst [vmem:[#allocation2 + $0x28] sm:$0xff] %v236_v18  ;;  %v653_v35 = vpack.c.bf16 (!%p609_p7), %v276_v34, %v275_v33  ;;  %v278_v38 = vld [vmem:[%s1219_s1 + $0x18] sm:$0xff] (!%p609_p7)  ;;  %v279_v40 = vld [vmem:[%s1219_s1 + $0x20] sm:$0xff] (!%p609_p7)  ;;  %v280_v41 = vld [vmem:[%s1219_s1 + $0x28] sm:$0xff] (!%p609_p7)  ;;  %v300_v57 = vsub.s32 (!%p609_p7), %v297_v50, %v294_v49  ;;  %v314_v58 = vsub.s32 (!%p609_p7), %v311_v51, %v294_v49  ;;  %v325_v60 = vadd.s32 (!%p609_p7), 4294967256, %v292_v48 }
  0x57   : > { %245 = vst [vmem:[#allocation2 + $0x30] sm:$0xff] %v237_v22  ;;  %246 = vst [vmem:[#allocation2 + $0x38] sm:$0xff] %v238_v24  ;;  %v656_v39 = vpack.c.bf16 (!%p609_p7), %v278_v38, %v277_v37  ;;  %v659_v42 = vpack.c.bf16 (!%p609_p7), %v280_v41, %v279_v40  ;;  %v281_v43 = vld [vmem:[%s1219_s1 + $0x30] sm:$0xff] (!%p609_p7)  ;;  %v282_v44 = vld [vmem:[%s1219_s1 + $0x38] sm:$0xff] (!%p609_p7)  ;;  %v307_v59 = vsub.s32 (!%p609_p7), %v304_v52, %v294_v49  ;;  %v332_v0 = vadd.s32 (!%p609_p7), 4294967248, %v292_v48 }
  0x58   : > { %654 = vmatpush3.bf16.msra.mxu0 %v653_v35  ;;  %v662_v45 = vpack.c.bf16 %v282_v44, %v281_v43  ;;  %v321_v63 = vsub.s32 %v318_v55, %v294_v49  ;;  %v339_v4 = vadd.s32 4294967240, %v292_v48  ;;  %v328_v6 = vsub.s32 %v325_v60, %v294_v49  ;;  %v420_v24 = vld [vmem:[%s1220_s2] sm:$0xf] }
  0x59   : > { %655 = vmatprep.subr.bf16.mxu0 %v936_v36  ;;  %vm323_vm4 = vcmask 326912   ;;  %v335_v13 = vsub.s32 %v332_v0, %v294_v49  ;;  %vm330_vm5 = vcmask 392512   ;;  %vm337_vm6 = vcmask 458112  }
  0x5a   : > { %v251_v25 = vld [vmem:[#allocation2] sm:$0xff]  ;;  %v252_v27 = vld [vmem:[#allocation2 + $0x8] sm:$0xff]  ;;  %v342_v14 = vsub.s32 %v339_v4, %v294_v49  ;;  %vm344_vm7 = vcmask 523712   ;;  %vm346_vm8 = vcmask 523264   ;;  %vm425_vm9 = vcmask 1043456  }
  0x5b   : > { %v253_v26 = vld [vmem:[#allocation2 + $0x10] sm:$0xff]  ;;  %259 = vmax.xlane.f32.xlu0 %v251_v25  ;;  %648 = vmatpush3.msk.msra.mxu1 %vm425_vm9, %v420_v24  ;;  %vm421_vm10 = vcmask 31744   ;;  %vm505_vm11 = vcmask 516096  }
  0x5c   : > { %263 = vmax.xlane.f32.xlu1 %v253_v26  ;;  %v254_v28 = vld [vmem:[#allocation2 + $0x18] sm:$0xff]  ;;  %v255_v29 = vld [vmem:[#allocation2 + $0x20] sm:$0xff]  ;;  %657 = vmatpush3.bf16.msra.mxu0 %v656_v39 }
  0x5d   : > { %v256_v30 = vld [vmem:[#allocation2 + $0x28] sm:$0xff]  ;;  %658 = vmatprep.subr.bf16.mxu0 %v936_v36 }
  0x5e   : > { %v257_v31 = vld [vmem:[#allocation2 + $0x30] sm:$0xff]  ;;  %v258_v32 = vld [vmem:[#allocation2 + $0x38] sm:$0xff] }
  0x5f   : > { %261 = vmax.xlane.f32.xlu0 %v252_v27 }
  0x60   : > { %265 = vmax.xlane.f32.xlu1 %v254_v28  ;;  %660 = vmatpush3.bf16.msra.mxu0 %v659_v42 }
  0x61   : > { %661 = vmatprep.subr.bf16.mxu0 %v936_v36 }
  0x63   : > { %267 = vmax.xlane.f32.xlu0 %v255_v29 }
  0x64   : > { %269 = vmax.xlane.f32.xlu1 %v256_v30  ;;  %663 = vmatpush3.bf16.msra.mxu0 %v662_v45 }
  0x67   : > { %271 = vmax.xlane.f32.xlu0 %v257_v31 }
  0x68   : > { %273 = vmax.xlane.f32.xlu1 %v258_v32 }
  0xe8   : > { %v260_v53 = vpop.xlane.xlu0 %259 }
  0xe9   : > { %v264_v54 = vpop.xlane.xlu1 %263  ;;  %v296_v1 = vrot.slane %v260_v53, %v295_v56 }
  0xea   : > { %v308_v5 = vrot.slane %v264_v54, %v307_v59 }
  0xec   : > { %v262_v61 = vpop.xlane.xlu0 %261 }
  0xed   : > { %v266_v62 = vpop.xlane.xlu1 %265  ;;  %v301_v2 = vrot.slane %v262_v61, %v300_v57 }
  0xee   : > { %v315_v3 = vrot.slane %v266_v62, %v314_v58 }
  0xef   : > { %v303_v7 = vsel %vm302_vm1, %v301_v2, %v296_v1 }
  0xf0   : > { %v310_v8 = vsel %vm309_vm2, %v308_v5, %v303_v7  ;;  %v268_v9 = vpop.xlane.xlu0 %267 }
  0xf1   : > { %v270_v10 = vpop.xlane.xlu1 %269  ;;  %v317_v11 = vsel %vm316_vm3, %v315_v3, %v310_v8  ;;  %v322_v12 = vrot.slane %v268_v9, %v321_v63 }
  0xf2   : > { %v329_v15 = vrot.slane %v270_v10, %v328_v6 }
  0xf3   : > { %v324_v16 = vsel %vm323_vm4, %v322_v12, %v317_v11 }
  0xf4   : > { %v272_v17 = vpop.xlane.xlu0 %271  ;;  %v331_v21 = vsel %vm330_vm5, %v329_v15, %v324_v16 }
  0xf5   : > { %v274_v18 = vpop.xlane.xlu1 %273  ;;  %v336_v19 = vrot.slane %v272_v17, %v335_v13 }
  0xf6   : > { %v343_v20 = vrot.slane %v274_v18, %v342_v14 }
  0xf7   : > { %v338_v22 = vsel %vm337_vm6, %v336_v19, %v331_v21 }
  0xf8   : > { %v345_v23 = vsel %vm344_vm7, %v343_v20, %v338_v22 }
  0xf9   : > { %645 = vmatmul.mubr.msk.f32.vlgmr.msra.gmra.mrb[0].mxu0 %vm346_vm8, %v345_v23 }
 0x1cc   : > { %v415_v25 = vpop.f32.mrb[0].mxu0 }
 0x1cd   : > { %v419_v26 = vmax.f32 %v415_v25, 0.0  ;;  %v646_v27 = vpop.f32.mrb[1].mxu0 }
 0x1cf   : > { %650 = vmatmul.mubr.msk.f32.vlgmr.msra.gmra.mrb[0].mxu1 %vm421_vm10, %v419_v26 }
 0x2a2   : > { %v495_v28 = vpop.f32.mrb[0].mxu1 }
 0x2a3   : > { %v613_v29 = vmul.f32 -1.442695, %v495_v28  ;;  %v651_v30 = vpop.f32.mrb[1].mxu1 }
 0x2a5   : > { %773 = vpow2.f32 %v613_v29 }
 0x2af   : > { %v774_v31 = vpop.eup %773 }
 0x2b0   : > { %v502_v32 = vadd.f32 1.0, %v774_v31 }
 0x2b2   : > { %775 = vrcp.f32 %v502_v32 }
 0x2bc   : > { %v776_v33 = vpop.eup %775 }
 0x2bd   : > { %506 = vst.msk [vmem:[%s1115_s6] sm:$0x1] %vm505_vm11, %v776_v33 }
 0x2be PF: > { %s614_s29 = sshll.u32 %s917_s19, 4  ;;  %s520_s30 = sshll.u32 %s1115_s6, 4  ;;  %s521_s30 = int_to_ptr.vmem [resolvable:$true] %s520_s30 }
 0x2bf   : > { %s1159_s11 = scalar_lea.hbm %s1221_s3, %s614_s29  ;;  %s508_s25 = scalar_lea.sflag [#allocation5], %s201_s24 }
 0x2c0   : > { %s807_s4 = scalar_lea.vmem %s521_s30, 16  ;;  %p1232_p4 = scmp.ne.s32.totalorder %s1229_s7, 0 }
 0x2c1   : > { %p808_p2 = scmp.ne.s32.totalorder %s521_s30, %s807_s4  ;;  %s939_s27 = smov [#allocation6]  }
 0x2c2   : > { %s811_s18 = sshll.u32 %s939_s27, 4  ;;  %s812_s18 = int_to_ptr.vmem [resolvable:$false] %s811_s18 }
 0x2c3   : > { %p809_p0 = pnand %p808_p2, %p1232_p4  ;;  %s813_s15 = scalar_lea.vmem %s812_s18, 32 }
 0x2c4   : > { %p814_p5 = scmp.lt.s32.totalorder %s521_s30, %s812_s18  ;;  %p815_p8 = scmp.lt.s32.totalorder %s813_s15, %s807_s4 }
 0x2c5   : > { %p810_p1 = pneg %p809_p0 }
 0x2c6   : > { %p816_p3 = por %p815_p8, %p814_p5 }
 0x2c8   : > { %p817_p10 = pnand %p816_p3, %p810_p1 }
 0x2ca   : > { %820 = shalt.err (!%p817_p10)
}
 0x2cb   : > { %s821_s19 = scalar_lea.hbm %s1159_s11, 16  ;;  %s825_s26 = scalar_lea.hbm %s1221_s3, 32 }
 0x2cc   : > { %p822_p11 = scmp.ne.s32.totalorder %s1159_s11, %s821_s19  ;;  %p826_p13 = scmp.lt.u32.totalorder %s1159_s11, %s1221_s3 }
 0x2cd   : > { %p827_p12 = scmp.lt.u32.totalorder %s825_s26, %s821_s19  ;;  %p829_p2 = scmp.lt.u32.totalorder %s821_s19, %s1159_s11 }
 0x2ce   : > { %p823_p6 = pnand %p822_p11, %p1232_p4 }
 0x2cf   : > { %p828_p7 = por %p827_p12, %p826_p13 }
 0x2d0   : > { %p824_p9 = pneg %p823_p6 }
 0x2d1   : > { %p830_p0 = por %p829_p2, %p828_p7 }
 0x2d3   : > { %p831_p1 = pnand %p830_p0, %p824_p9 }
 0x2d5   : > { %834 = shalt.err (!%p831_p1)
}
 0x2d6   : > { %666 = dma.vmem_to_hbm [thread:$0]  (%p1232_p4), %s521_s30, 16, %s1159_s11, %s508_s25  }
 0x2d7 PF: > { %p677_p5 = scmp.ge.s32.totalorder %s929_s22, 2  ;;  %s532_s28 = sand.u32 1, %s889_s12  }
 0x2d8   : > { %p1233_p8 = scmp.ne.s32.totalorder %s1230_s10, 0  ;;  %s533_s5 = scalar_lea.sflag [#allocation5], %s532_s28 }
 0x2da   : > { %p673_p3 = pnand %p677_p5, %p1233_p8 }
 0x2dc   : > { %884 = dma.done.wait (!%p673_p3), %s533_s5, 16  }
 0x2dd   : > { %886 = vsyncadd (!%p673_p3), %s533_s5, 4294967280  ;;  %s19_s22 = sadd.s32 1, %s929_s22   ;;  %s1234_s7 = sld [smem:[#allocation9_spill]] }
 0x2de   : > { %p16_p10 = scmp.ge.s32.totalorder %s19_s22, 6   ;;  %s1235_s11 = sld [smem:[#allocation10_spill]] }
 0x2df   : > { %s1236_s12 = smov %s893_s13  ;;  %s1237_s13 = smov %s897_s14 }
 0x2e0   : > { %s1238_s14 = smov %s1047_s8  ;;  %s1239_s15 = smov %s905_s16 }
 0x2e1   : > { %s1240_s16 = smov %s909_s17  ;;  %s1241_s17 = smov %s1050_s9 }
 0x2e2   : > { %s1242_s18 = smov %s921_s20  ;;  %s1243_s19 = smov %s925_s21 }
 0x2e3   : > { %s1244_s20 = smov %s1234_s7  ;;  %18 = sbr.rel (!%p16_p10) target bundleno = 9 (0x9), region = 85 }
 0x2e4   : > { %s1245_s21 = smov %s1235_s11 }
 0x2ea   :  { %537 = vsyncpa [#allocation4], 1 }
 0x2eb   :  { %539 = vsyncpa [#allocation4 + $0x1], 1 }
 0x2ec   :  { %540 = vsyncpa [#allocation5], 1 }
 0x2ed   :  { %542 = vsyncpa [#allocation5 + $0x1], 1 }

</bundles_post_ra>
